<compile_context>
chip_gen: v7x
topology: tpu7x:2x2x1
jax: 0.10.0
libtpu: 0.0.40
codegen_flags: <defaults>
</compile_context>

<pallas_src>
import jax
import jax.numpy as jnp
from jax.experimental import pallas as pl
from jax.experimental.pallas import tpu as pltpu


def _round_up(a, b):
    return -(-a // b) * b


def _pick_row_tile(L, cap=2048):
    """Largest multiple-of-8 divisor of L that is <= cap (or L itself)."""
    if L <= cap:
        return L
    t = cap - (cap % 8)
    while t >= 8:
        if L % t == 0:
            return t
        t -= 8
    return L


def _basic_conv_kernel(x_ref, w_ref, o_ref):
    # x_ref : (4, Lt, Kc) bf16 - im2col rows for the 4 positions of each 2x2
    #                            pool window; border rows pre-zeroed; last
    #                            valid lane is the border mask (bias gate).
    # w_ref : (Kc, Cb)    bf16 - folded conv weights; last valid row = bias.
    # o_ref : (Lt, Cb)         - final pooled output block.
    w = w_ref[...]
    acc = jnp.dot(x_ref[0], w, preferred_element_type=jnp.float32)
    for q in range(1, 4):
        acc = jnp.maximum(acc, jnp.dot(x_ref[q], w,
                                       preferred_element_type=jnp.float32))
    # max over the window commutes with ReLU, and the pre-zeroed border rows
    # contribute exactly the 0 that F.pad would have inserted before ReLU/pool.
    o_ref[...] = jnp.maximum(acc, 0.0).astype(o_ref.dtype)


def basic_conv_forward(x_nchw, weight_oihw, bias, kernel_size,
                       is_pooling=True, is_upsampling=False):
    """Pallas implementation of BasicConv.forward (default config)."""
    # TODO(synk): isUpsampling=True (bilinear Upsample x2) not implemented here.
    # TODO(synk): isPooling=False branch not implemented (default is True).
    assert is_pooling and not is_upsampling, "only the default BasicConv config is implemented"

    N, Cin, H, W = x_nchw.shape
    Cout, Cin_w, k, k2 = weight_oihw.shape
    assert Cin_w == Cin and k == k2 == kernel_size
    assert k % 2 == 1, "padding (k-1)/2 restores spatial size only for odd kernels"
    assert H % 2 == 0 and W % 2 == 0
    p = (k - 1) // 2
    assert H > 2 * p and W > 2 * p

    Ho, Wo = H // 2, W // 2
    L = Ho * Wo
    kkC = k * k * Cin
    Kc = _round_up(kkC + 1, 8)          # taps*Cin + mask/bias lane, 8-aligned

    # -------- wrapper-side im2col / layout plumbing (plain XLA) --------
    xh = jnp.transpose(x_nchw, (0, 2, 3, 1)).astype(jnp.float32)     # NHWC
    xp = jnp.pad(xh, ((0, 0), (p, p), (p, p), (0, 0)))
    taps = [xp[:, ky:ky + H, kx:kx + W, :]
            for ky in range(k) for kx in range(k)]
    patches = jnp.concatenate(taps, axis=-1)                         # (N,H,W,kkC)

    rr = jnp.arange(H)
    cc = jnp.arange(W)
    valid = (((rr >= p) & (rr < H - p))[:, None]
             & ((cc >= p) & (cc < W - p))[None, :]).astype(jnp.float32)  # (H,W)
    lhs = jnp.concatenate(
        [patches * valid[None, :, :, None],
         jnp.broadcast_to(valid[None, :, :, None], (N, H, W, 1))], axis=-1)
    lhs = jnp.pad(lhs, ((0, 0), (0, 0), (0, 0), (0, Kc - (kkC + 1))))
    # Group the 4 conv positions of each 2x2 pooling window into 4 slabs:
    # (N,H,W,Kc) -> (N, sy, sx, Ho, Wo, Kc) -> (N, 4, Ho*Wo, Kc)
    lhs = lhs.reshape(N, Ho, 2, Wo, 2, Kc)
    lhs = jnp.transpose(lhs, (0, 2, 4, 1, 3, 5)).reshape(N, 4, L, Kc)
    lhs = lhs.astype(jnp.bfloat16)

    # Folded weights: row (ky*k+kx)*Cin+ci matches the tap concat order; then
    # the bias row (gated by the mask lane), then zero rows up to Kc.
    wf = jnp.transpose(weight_oihw, (2, 3, 1, 0)).reshape(kkC, Cout)
    wf = jnp.concatenate([wf, bias.reshape(1, Cout)], axis=0)        # (kkC+1, Cout)
    wf = jnp.pad(wf, ((0, Kc - (kkC + 1)), (0, 0)))

    n_cblk = -(-Cout // 128)
    if n_cblk == 1:
        Cb = Cout                      # store exactly Cout lanes (full-dim block)
    else:
        Cb = 128
        wf = jnp.pad(wf, ((0, 0), (0, n_cblk * 128 - Cout)))
    wf = wf.astype(jnp.bfloat16)
    C_total = n_cblk * Cb

    Lt = _pick_row_tile(L)
    n_rblk = L // Lt
    out_dtype = x_nchw.dtype

    # VMEM budget: lane/sublane-padded double-buffered blocks + live f32 slabs.
    x_blk = 4 * _round_up(Lt, 16) * _round_up(Kc, 128) * 2
    w_blk = _round_up(Kc, 16) * _round_up(Cb, 128) * 2
    o_blk = _round_up(Lt, 8) * _round_up(Cb, 128) * jnp.dtype(out_dtype).itemsize
    live = 3 * _round_up(Lt, 8) * 128 * 4
    vmem_limit = int(min(48 << 20,
                         max(32 << 20, 2 * (x_blk + w_blk + o_blk) + 2 * live)))

    out2 = pl.pallas_call(
        _basic_conv_kernel,
        out_shape=jax.ShapeDtypeStruct((N, L, C_total), out_dtype),
        grid_spec=pltpu.PrefetchScalarGridSpec(
            num_scalar_prefetch=0,
            grid=(N, n_rblk, n_cblk),
            in_specs=[
                pl.BlockSpec((None, 4, Lt, Kc), lambda n, rb, cb: (n, 0, rb, 0)),
                pl.BlockSpec((Kc, Cb), lambda n, rb, cb: (0, cb)),
            ],
            out_specs=pl.BlockSpec((None, Lt, Cb), lambda n, rb, cb: (n, rb, cb)),
        ),
        compiler_params=pltpu.CompilerParams(
            dimension_semantics=("parallel", "parallel", "parallel"),
            vmem_limit_bytes=vmem_limit),
    )(lhs, wf)

    # Final layout only: un-flatten spatial, drop channel padding (no-op when
    # Cout <= 128), and NHWC -> NCHW to match the PyTorch output convention.
    out = out2.reshape(N, Ho, Wo, C_total)[..., :Cout]
    return jnp.transpose(out, (0, 3, 1, 2))


def _reference_forward(x_nchw, weight_oihw, bias, kernel_size):
    """Pure-JAX reference mirroring the PyTorch forward exactly (f32)."""
    p = (kernel_size - 1) // 2
    y = jax.lax.conv_general_dilated(
        x_nchw, weight_oihw, window_strides=(1, 1), padding="VALID",
        dimension_numbers=("NCHW", "OIHW", "NCHW"))
    y = y + bias[None, :, None, None]
    y = jnp.pad(y, ((0, 0), (0, 0), (p, p), (p, p)))
    y = jnp.maximum(y, 0.0)
    y = jax.lax.reduce_window(y, -jnp.inf, jax.lax.max,
                              (1, 1, 2, 2), (1, 1, 2, 2), "VALID")
    return y


if __name__ == "__main__":
    # Small shapes consistent with the module: N=2, Cin=4, H=W=16, Cout=8, k=3.
    N, Cin, H, W = 2, 4, 16, 16
    Cout, K = 8, 3

    key = jax.random.PRNGKey(0)
    kx, kw, kb = jax.random.split(key, 3)
    x = jax.random.normal(kx, (N, Cin, H, W), dtype=jnp.float32)
    weight = 0.2 * jax.random.normal(kw, (Cout, Cin, K, K), dtype=jnp.float32)
    bias = 0.1 * jax.random.normal(kb, (Cout,), dtype=jnp.float32)

    out = basic_conv_forward(x, weight, bias, K)
    out = jax.block_until_ready(out)

    assert out.shape == (N, Cout, H // 2, W // 2), out.shape

    ref = jax.block_until_ready(_reference_forward(x, weight, bias, K))
    assert jnp.allclose(out, ref, atol=2e-2, rtol=2e-2), (
        float(jnp.max(jnp.abs(out - ref))))

    print("KERNEL_OK")
</pallas_src>

<mosaic_0001>
module attributes {stable_mosaic.version = 11 : i64} {
  func.func @_basic_conv_kernel(%arg0: i32, %arg1: i32, %arg2: i32, %arg3: memref<1x4x64x40xbf16, #tpu.memory_space<vmem>>, %arg4: memref<40x8xbf16, #tpu.memory_space<vmem>>, %arg5: memref<1x64x8xf32, #tpu.memory_space<vmem>>) attributes {dimension_semantics = [#tpu.dimension_semantics<parallel>, #tpu.dimension_semantics<parallel>, #tpu.dimension_semantics<parallel>], iteration_bounds = array<i64: 2, 1, 1>, scalar_prefetch = 0 : i64, scratch_operands = 0 : i64, tpu.core_type = #tpu.core_type<tc>, window_params = [{transform_indices = @transform_0, window_bounds = array<i64: 1, 4, 64, 40>}, {transform_indices = @transform_1, window_bounds = array<i64: 40, 8>}, {transform_indices = @transform_2, window_bounds = array<i64: 1, 64, 8>}]} {
    %c0 = arith.constant 0 : index
    %c0_0 = arith.constant 0 : index
    %0 = vector.load %arg4[%c0, %c0_0] : memref<40x8xbf16, #tpu.memory_space<vmem>>, vector<40x8xbf16>
    %c0_1 = arith.constant 0 : index
    %c0_2 = arith.constant 0 : index
    %c0_3 = arith.constant 0 : index
    %c0_4 = arith.constant 0 : index
    %1 = vector.load %arg3[%c0_1, %c0_2, %c0_3, %c0_4] : memref<1x4x64x40xbf16, #tpu.memory_space<vmem>>, vector<1x1x64x40xbf16>
    %2 = vector.shape_cast %1 : vector<1x1x64x40xbf16> to vector<64x40xbf16>
    %cst = arith.constant dense<0.000000e+00> : vector<64x8xf32>
    %3 = tpu.matmul %2, %0, %cst {dimension_numbers = #tpu.dot_dimension_numbers<[1], [0], [0], [1], [0, 0, 1, 1], [], []>} : vector<64x40xbf16>, vector<40x8xbf16>, vector<64x8xf32> -> vector<64x8xf32>
    %c0_5 = arith.constant 0 : index
    %c1 = arith.constant 1 : index
    %c0_6 = arith.constant 0 : index
    %c0_7 = arith.constant 0 : index
    %4 = vector.load %arg3[%c0_5, %c1, %c0_6, %c0_7] : memref<1x4x64x40xbf16, #tpu.memory_space<vmem>>, vector<1x1x64x40xbf16>
    %5 = vector.shape_cast %4 : vector<1x1x64x40xbf16> to vector<64x40xbf16>
    %cst_8 = arith.constant dense<0.000000e+00> : vector<64x8xf32>
    %6 = tpu.matmul %5, %0, %cst_8 {dimension_numbers = #tpu.dot_dimension_numbers<[1], [0], [0], [1], [0, 0, 1, 1], [], []>} : vector<64x40xbf16>, vector<40x8xbf16>, vector<64x8xf32> -> vector<64x8xf32>
    %7 = arith.maximumf %3, %6 : vector<64x8xf32>
    %c0_9 = arith.constant 0 : index
    %c2 = arith.constant 2 : index
    %c0_10 = arith.constant 0 : index
    %c0_11 = arith.constant 0 : index
    %8 = vector.load %arg3[%c0_9, %c2, %c0_10, %c0_11] : memref<1x4x64x40xbf16, #tpu.memory_space<vmem>>, vector<1x1x64x40xbf16>
    %9 = vector.shape_cast %8 : vector<1x1x64x40xbf16> to vector<64x40xbf16>
    %cst_12 = arith.constant dense<0.000000e+00> : vector<64x8xf32>
    %10 = tpu.matmul %9, %0, %cst_12 {dimension_numbers = #tpu.dot_dimension_numbers<[1], [0], [0], [1], [0, 0, 1, 1], [], []>} : vector<64x40xbf16>, vector<40x8xbf16>, vector<64x8xf32> -> vector<64x8xf32>
    %11 = arith.maximumf %7, %10 : vector<64x8xf32>
    %c0_13 = arith.constant 0 : index
    %c3 = arith.constant 3 : index
    %c0_14 = arith.constant 0 : index
    %c0_15 = arith.constant 0 : index
    %12 = vector.load %arg3[%c0_13, %c3, %c0_14, %c0_15] : memref<1x4x64x40xbf16, #tpu.memory_space<vmem>>, vector<1x1x64x40xbf16>
    %13 = vector.shape_cast %12 : vector<1x1x64x40xbf16> to vector<64x40xbf16>
    %cst_16 = arith.constant dense<0.000000e+00> : vector<64x8xf32>
    %14 = tpu.matmul %13, %0, %cst_16 {dimension_numbers = #tpu.dot_dimension_numbers<[1], [0], [0], [1], [0, 0, 1, 1], [], []>} : vector<64x40xbf16>, vector<40x8xbf16>, vector<64x8xf32> -> vector<64x8xf32>
    %15 = arith.maximumf %11, %14 : vector<64x8xf32>
    %cst_17 = arith.constant 0.000000e+00 : f32
    %16 = vector.broadcast %cst_17 : f32 to vector<64x8xf32>
    %17 = arith.maximumf %15, %16 : vector<64x8xf32>
    %c0_18 = arith.constant 0 : index
    %c0_19 = arith.constant 0 : index
    %c0_20 = arith.constant 0 : index
    %18 = vector.load %arg5[%c0_18, %c0_19, %c0_20] : memref<1x64x8xf32, #tpu.memory_space<vmem>>, vector<1x64x8xf32>
    %19 = vector.shape_cast %18 : vector<1x64x8xf32> to vector<64x8xf32>
    %20 = vector.shape_cast %17 : vector<64x8xf32> to vector<1x64x8xf32>
    tpu.vector_store %arg5[%c0_18, %c0_19, %c0_20], %20 {strides = array<i32>} : memref<1x64x8xf32, #tpu.memory_space<vmem>>, vector<1x64x8xf32>,
    return
  }
  func.func @transform_0(%arg0: i32, %arg1: i32, %arg2: i32) -> (i32, i32, i32, i32) {
    %c0_i32 = arith.constant 0 : i32
    %c0_i32_0 = arith.constant 0 : i32
    %c0_i32_1 = arith.constant 0 : i32
    return %arg0, %c0_i32, %arg1, %c0_i32_0 : i32, i32, i32, i32
  }
  func.func @transform_1(%arg0: i32, %arg1: i32, %arg2: i32) -> (i32, i32) {
    %c0_i32 = arith.constant 0 : i32
    %c0_i32_0 = arith.constant 0 : i32
    return %c0_i32, %arg2 : i32, i32
  }
  func.func @transform_2(%arg0: i32, %arg1: i32, %arg2: i32) -> (i32, i32, i32) {
    %c0_i32 = arith.constant 0 : i32
    return %arg0, %arg1, %arg2 : i32, i32, i32
  }
}

</mosaic_0001>

<bundles_post_ra>
// kernel: tpu_custom_call.1
= control target key start
LH: loop header
LB: loop body
LE: loop exit
PB: predicated region body
PF: predicated region fallthrough
CT: control target
= control target key end

     0   :  { %s1063_s9 = smov 0   ;;  %s1065_s10 = smov 0   ;;  %s1166_s0 = inlined_call_operand.vmem [shape: bf16[2,4,64,40], index: 0, kind: input, shape index: {}]   ;;  %s1167_s1 = inlined_call_operand.vmem [shape: bf16[40,8], index: 1, kind: input, shape index: {}]   ;;  %s1168_s2 = inlined_call_operand.vmem [shape: f32[2,64,8], index: 2, kind: output, shape index: {}]  }
   0x1   :  { %s1067_s11 = smov 0  }
   0x2 LB: > { %s31_s12 = sadd.s32 1, %s1042_s10  ;;  %p825_p0 = scmp.ge.s32.totalorder %s1046_s11, 1  ;;  %s1046_s11 = sphi %s1067_s11, %s12_s11   ;;  %s1042_s10 = sphi %s1065_s10, %s1170_s10   ;;  %s1038_s9 = sphi %s1063_s9, %s1169_s9  }
   0x3   : > { %p33_p1 = scmp.ge.s32.totalorder %s31_s12, 2  ;;  %p151_p2 = scmp.lt.s32.totalorder %s1046_s11, 3 }
   0x5   : > { %s1172_s12 = smov (%p33_p1, %s31_s12), 0  ;;  %p152_p3 = pnand %p825_p0, %p151_p2 }
   0x6   : > { %v1005_v0 = vld [vmem:[%s1167_s1] sm:$0xff] (!%p152_p3)   ;;  %v1006_v1 = vld [vmem:[%s1167_s1 + $0x8] sm:$0xff] (!%p152_p3)   ;;  %p189_p4 = scmp.lt.s32.totalorder (!%p152_p3), %s1038_s9, 1  ;;  %v1007_v2 = vld [vmem:[%s1167_s1 + $0x10] ss:$0 sps:$4 sm:$0xff] (!%p152_p3)   ;;  %vm277_vm0 = vcmask (!%p152_p3), 1043456  }
   0x7   : > { %155 = sbr.rel (%p152_p3) target bundleno = 265 (0x109), region = 28  ;;  %921 = vmatprep.subr.bf16.mxu0 (!%p152_p3), %v1005_v0  ;;  %935 = vmatprep.subr.bf16.mxu1 (!%p152_p3), %v1005_v0  ;;  %vm264_vm1 = vcmask (!%p152_p3), 326656   ;;  %v279_v4 = vsel (!%p152_p3), %vm277_vm0, %v1007_v2, 0  ;;  %vm696_vm2 = vcmask (!%p152_p3), 64512  }
   0x8   : > { %922 = vmatpush3.bf16.msra.mxu0 (!%p152_p3), %v1005_v0  ;;  %936 = vmatpush3.bf16.msra.mxu1 (!%p152_p3), %v1005_v0 }
   0x9   : > { %923 = vmatprep.subr.bf16.mxu0 (!%p152_p3), %v1006_v1  ;;  %937 = vmatprep.subr.bf16.mxu1 (!%p152_p3), %v1006_v1 }
   0xc   : > { %924 = vmatpush3.bf16.msra.mxu0 (!%p152_p3), %v1006_v1  ;;  %938 = vmatpush3.bf16.msra.mxu1 (!%p152_p3), %v1006_v1 }
   0xd   : > { %977 = vmatprep.subr.msk.bf16.mxu0 (!%p152_p3), %vm277_vm0, %v1007_v2  ;;  %978 = vmatprep.subr.msk.bf16.mxu1 (!%p152_p3), %vm277_vm0, %v1007_v2 }
   0xe   : > { %s1174_s9 = smov (!%p189_p4, %s1038_s9), 1 }
   0xf   : > { %s891_s19 = sshll.u32 %s1174_s9, 7  ;;  %s892_s23 = sshll.u32 %s1174_s9, 6 }
  0x10   : > { %s1096_s22 = scalar_lea.vmem %s1166_s0, %s891_s19  ;;  %926 = vmatpush3.bf16.msra.mxu0 %v279_v4  ;;  %940 = vmatpush3.bf16.msra.mxu1 %v279_v4  ;;  %s1139_s26 = scalar_lea.vmem %s1168_s2, %s892_s23 }
  0x11   : > { %v1008_v3 = vld [vmem:[%s1096_s22] sm:$0xff]   ;;  %v1010_v6 = vld [vmem:[%s1096_s22 + $0x8] sm:$0xff]   ;;  %949 = vmatprep.subr.bf16.mxu0 %v1005_v0  ;;  %963 = vmatprep.subr.bf16.mxu1 %v1005_v0  ;;  %v1012_v8 = vld [vmem:[%s1096_s22 + $0x10] sm:$0xff]  }
  0x12   : > { %v1009_v5 = vld [vmem:[%s1096_s22 + $0x20] sm:$0xff]   ;;  %927 = vmatprep.mubr.msk.bf16.mxu0 %vm264_vm1, %v1008_v3  ;;  %v1011_v7 = vld [vmem:[%s1096_s22 + $0x28] sm:$0xff]   ;;  %v1013_v9 = vld [vmem:[%s1096_s22 + $0x30] sm:$0xff]  }
  0x13   : > { %941 = vmatprep.mubr.msk.bf16.mxu1 %vm264_vm1, %v1009_v5  ;;  %928 = vmatmul.mubr.msk.bf16.vlgmr.msra.gmra.mrb[0].mxu0 %vm264_vm1, %v1010_v6  ;;  %v1014_v10 = vld [vmem:[%s1096_s22 + $0x18] sm:$0xff]   ;;  %v1016_v12 = vld [vmem:[%s1096_s22 + $0x40] sm:$0xff]   ;;  %v1018_v14 = vld [vmem:[%s1096_s22 + $0x48] sm:$0xff]  }
  0x14   : > { %942 = vmatmul.mubr.msk.bf16.vlgmr.msra.gmra.mrb[0].mxu1 %vm264_vm1, %v1011_v7  ;;  %950 = vmatpush3.bf16.msra.mxu0 %v1005_v0  ;;  %v1015_v11 = vld [vmem:[%s1096_s22 + $0x38] sm:$0xff]   ;;  %v1017_v13 = vld [vmem:[%s1096_s22 + $0x60] sm:$0xff]   ;;  %v1019_v15 = vld [vmem:[%s1096_s22 + $0x68] sm:$0xff]  }
  0x15   : > { %964 = vmatpush3.bf16.msra.mxu1 %v1005_v0  ;;  %951 = vmatprep.subr.bf16.mxu0 %v1006_v1  ;;  %v1020_v16 = vld [vmem:[%s1096_s22 + $0x50] sm:$0xff]   ;;  %v1022_v18 = vld [vmem:[%s1096_s22 + $0x58] sm:$0xff]  }
  0x16   : > { %931 = vmatprep.mubr.msk.bf16.mxu0 %vm264_vm1, %v1012_v8  ;;  %945 = vmatprep.mubr.msk.bf16.mxu1 %vm264_vm1, %v1013_v9  ;;  %v1021_v17 = vld [vmem:[%s1096_s22 + $0x70] sm:$0xff]   ;;  %v1023_v19 = vld [vmem:[%s1096_s22 + $0x78] sm:$0xff]  }
  0x17   : > { %965 = vmatprep.subr.bf16.mxu1 %v1006_v1 }
  0x18   : > { %952 = vmatpush3.bf16.msra.mxu0 %v1006_v1 }
  0x19   : > { %966 = vmatpush3.bf16.msra.mxu1 %v1006_v1  ;;  %979 = vmatprep.subr.msk.bf16.mxu0 %vm277_vm0, %v1007_v2 }
  0x1a   : > { %980 = vmatprep.subr.msk.bf16.mxu1 %vm277_vm0, %v1007_v2 }
  0x1b   : > { %932 = vmatmul.mubr.msk.bf16.gmra.mrb[4].mxu0 %vm264_vm1, %v1014_v10 }
  0x1c   : > { %946 = vmatmul.mubr.msk.bf16.gmra.mrb[4].mxu1 %vm264_vm1, %v1015_v11  ;;  %954 = vmatpush3.bf16.msra.mxu0 %v279_v4 }
  0x1d   : > { %968 = vmatpush3.bf16.msra.mxu1 %v279_v4  ;;  %955 = vmatprep.mubr.msk.bf16.mxu0 %vm264_vm1, %v1016_v12 }
  0x1e   : > { %969 = vmatprep.mubr.msk.bf16.mxu1 %vm264_vm1, %v1017_v13 }
  0x23   : > { %956 = vmatmul.mubr.msk.bf16.vlgmr.msra.gmra.mrb[8].mxu0 %vm264_vm1, %v1018_v14 }
  0x24   : > { %970 = vmatmul.mubr.msk.bf16.vlgmr.msra.gmra.mrb[8].mxu1 %vm264_vm1, %v1019_v15  ;;  %959 = vmatprep.mubr.msk.bf16.mxu0 %vm264_vm1, %v1020_v16 }
  0x25   : > { %973 = vmatprep.mubr.msk.bf16.mxu1 %vm264_vm1, %v1021_v17 }
  0x2b   : > { %960 = vmatmul.mubr.msk.bf16.gmra.mrb[12].mxu0 %vm264_vm1, %v1022_v18 }
  0x2c   : > { %974 = vmatmul.mubr.msk.bf16.gmra.mrb[12].mxu1 %vm264_vm1, %v1023_v19 }
  0xe6   : > { %v929_v20 = vpop.f32.mrb[0].mxu0 }
  0xe7   : > { %v943_v21 = vpop.f32.mrb[0].mxu1  ;;  %v315_v23 = vpop.f32.mrb[1].mxu0 }
  0xe8   : > { %v454_v22 = vmax.f32 %v929_v20, %v943_v21  ;;  %v421_v24 = vpop.f32.mrb[1].mxu1  ;;  %v930_v26 = vpop.f32.mrb[2].mxu0 }
  0xe9   : > { %v452_v25 = vmax.f32 %v315_v23, %v421_v24  ;;  %v944_v27 = vpop.f32.mrb[2].mxu1  ;;  %v318_v29 = vpop.f32.mrb[3].mxu0 }
  0xea   : > { %v455_v28 = vmax.f32 %v930_v26, %v944_v27  ;;  %v424_v30 = vpop.f32.mrb[3].mxu1 }
  0xeb   : > { %v453_v31 = vmax.f32 %v318_v29, %v424_v30 }
  0xee   : > { %v933_v32 = vpop.f32.mrb[4].mxu0 }
  0xef   : > { %v947_v33 = vpop.f32.mrb[4].mxu1  ;;  %v331_v35 = vpop.f32.mrb[5].mxu0 }
  0xf0   : > { %v458_v34 = vmax.f32 %v933_v32, %v947_v33  ;;  %v437_v36 = vpop.f32.mrb[5].mxu1  ;;  %v934_v38 = vpop.f32.mrb[6].mxu0 }
  0xf1   : > { %v456_v37 = vmax.f32 %v331_v35, %v437_v36  ;;  %v948_v39 = vpop.f32.mrb[6].mxu1  ;;  %v334_v41 = vpop.f32.mrb[7].mxu0 }
  0xf2   : > { %v459_v40 = vmax.f32 %v934_v38, %v948_v39  ;;  %v440_v42 = vpop.f32.mrb[7].mxu1 }
  0xf3   : > { %v457_v43 = vmax.f32 %v334_v41, %v440_v42 }
  0xf6   : > { %v957_v44 = vpop.f32.mrb[8].mxu0 }
  0xf7   : > { %v971_v45 = vpop.f32.mrb[8].mxu1  ;;  %v568_v46 = vmax.f32 %v454_v22, %v957_v44  ;;  %v535_v47 = vpop.f32.mrb[9].mxu0 }
  0xf8   : > { %v649_v48 = vpop.f32.mrb[9].mxu1  ;;  %v566_v49 = vmax.f32 %v452_v25, %v535_v47  ;;  %v958_v50 = vpop.f32.mrb[10].mxu0 }
  0xf9   : > { %v972_v51 = vpop.f32.mrb[10].mxu1  ;;  %v682_v52 = vmax.f32 %v568_v46, %v971_v45  ;;  %v569_v53 = vmax.f32 %v455_v28, %v958_v50  ;;  %v538_v54 = vpop.f32.mrb[11].mxu0 }
  0xfa   : > { %v652_v55 = vpop.f32.mrb[11].mxu1  ;;  %v680_v56 = vmax.f32 %v566_v49, %v649_v48  ;;  %v567_v57 = vmax.f32 %v453_v31, %v538_v54 }
  0xfb   : > { %v690_v58 = vmax.f32 %v682_v52, 0.0  ;;  %v683_v59 = vmax.f32 %v569_v53, %v972_v51 }
  0xfc   : > { %v688_v60 = vmax.f32 %v680_v56, 0.0  ;;  %v681_v61 = vmax.f32 %v567_v57, %v652_v55 }
  0xfd   : > { %699 = vst.msk [vmem:[%s1139_s26 + $0x10] sm:$0xff] %vm696_vm2, %v690_v58  ;;  %v691_v62 = vmax.f32 %v683_v59, 0.0 }
  0xfe   : > { %697 = vst.msk [vmem:[%s1139_s26] sm:$0xff] %vm696_vm2, %v688_v60  ;;  %v689_v63 = vmax.f32 %v681_v61, 0.0  ;;  %v961_v0 = vpop.f32.mrb[12].mxu0 }
  0xff   : > { %v975_v1 = vpop.f32.mrb[12].mxu1  ;;  %700 = vst.msk [vmem:[%s1139_s26 + $0x18] sm:$0xff] %vm696_vm2, %v691_v62  ;;  %v572_v2 = vmax.f32 %v458_v34, %v961_v0  ;;  %v551_v3 = vpop.f32.mrb[13].mxu0 }
 0x100   : > { %v665_v4 = vpop.f32.mrb[13].mxu1  ;;  %698 = vst.msk [vmem:[%s1139_s26 + $0x8] sm:$0xff] %vm696_vm2, %v689_v63  ;;  %v570_v5 = vmax.f32 %v456_v37, %v551_v3  ;;  %v962_v6 = vpop.f32.mrb[14].mxu0 }
 0x101   : > { %v976_v7 = vpop.f32.mrb[14].mxu1  ;;  %v686_v8 = vmax.f32 %v572_v2, %v975_v1  ;;  %v573_v9 = vmax.f32 %v459_v40, %v962_v6  ;;  %v554_v10 = vpop.f32.mrb[15].mxu0 }
 0x102   : > { %v668_v11 = vpop.f32.mrb[15].mxu1  ;;  %v684_v12 = vmax.f32 %v570_v5, %v665_v4  ;;  %v571_v13 = vmax.f32 %v457_v43, %v554_v10 }
 0x103   : > { %v694_v14 = vmax.f32 %v686_v8, 0.0  ;;  %v687_v15 = vmax.f32 %v573_v9, %v976_v7 }
 0x104   : > { %v692_v16 = vmax.f32 %v684_v12, 0.0  ;;  %v685_v17 = vmax.f32 %v571_v13, %v668_v11 }
 0x105   : > { %703 = vst.msk [vmem:[%s1139_s26 + $0x30] sm:$0xff] %vm696_vm2, %v694_v14  ;;  %v695_v18 = vmax.f32 %v687_v15, 0.0 }
 0x106   : > { %701 = vst.msk [vmem:[%s1139_s26 + $0x20] sm:$0xff] %vm696_vm2, %v692_v16  ;;  %v693_v19 = vmax.f32 %v685_v17, 0.0 }
 0x107   : > { %704 = vst.msk [vmem:[%s1139_s26 + $0x38] sm:$0xff] %vm696_vm2, %v695_v18 }
 0x108   : > { %702 = vst.msk [vmem:[%s1139_s26 + $0x28] sm:$0xff] %vm696_vm2, %v693_v19 }
 0x109 PF: > { %s12_s11 = sadd.s32 1, %s1046_s11   ;;  %s1169_s9 = smov %s1042_s10 }
 0x10a   : > { %p9_p5 = scmp.ge.s32.totalorder %s12_s11, 4   ;;  %s1170_s10 = smov %s1172_s12 }
 0x10c   :  { %11 = sbr.rel (!%p9_p5) target bundleno = 2 (0x2), region = 64 }

</bundles_post_ra>
